<compile_context>
chip_gen: v7x
topology: tpu7x:2x2x1
jax: 0.10.0
libtpu: 0.0.40
codegen_flags: <defaults>
</compile_context>

<pallas_src>
import jax
import jax.numpy as jnp
from jax.experimental import pallas as pl
from jax.experimental.pallas import tpu as pltpu


NEG_SLOPE = 0.05  # nn.LeakyReLU(0.05)
LANE = 128


def _round_up(x, m):
    return (x + m - 1) // m * m


def _leaky_relu(x):
    return jnp.where(x > 0, x, NEG_SLOPE * x)


def _vmem_cap_bytes():
    """Generation-aware usable VMEM cap (v7x ~64 MiB phys, v5e/v6e ~128 MiB)."""
    try:
        return int(pltpu.get_tpu_info().vmem_capacity_bytes * 0.85)
    except Exception:
        return 48 << 20  # conservative fallback that fits every generation


def _make_fcn_kernel(resident, d_out):
    """Build the per-(batch_tile, layer) kernel body.

    x_ref: (TILE_B, D) bf16          -- input tile (same block across layer axis)
    w_ref: (L+2, D, D) or (1, D, D)  -- resident stack or streamed slab, bf16
    b_ref: (L+2, 1, D) or (1, 1, D)  -- biases, f32
    o_ref: (TILE_B, D_OUT) f32       -- output tile (written only at last layer)
    h_ref: (TILE_B, D) bf16 VMEM     -- running activation, persists across layers
    """

    def kernel(x_ref, w_ref, b_ref, o_ref, h_ref):
        l = pl.program_id(1)
        n_layers = pl.num_programs(1)
        idx = l if resident else 0

        # First layer of this batch tile: seed the running activation with x.
        @pl.when(l == 0)
        def _():
            h_ref[...] = x_ref[...]

        # y = h @ W_l + b_l : bf16 MXU matmul, f32 accumulation, f32 bias (VPU).
        y = jnp.dot(h_ref[...], w_ref[idx],
                    preferred_element_type=jnp.float32) + b_ref[idx]

        # Hidden/input layers: LeakyReLU(0.05), keep activation resident (bf16).
        @pl.when(l < n_layers - 1)
        def _():
            h_ref[...] = _leaky_relu(y).astype(h_ref.dtype)

        # Output layer: Identity activation, lane-aligned narrow store.
        @pl.when(l == n_layers - 1)
        def _():
            o_ref[...] = y[:, :d_out].astype(o_ref.dtype)

    return kernel


def fcn_forward(x, w_stack, b_stack, *, output_size, tile_b=512):
    """x: (B, input_size) f32.  w_stack: (L+2, D, D) bf16.  b_stack: (L+2, 1, D) f32."""
    batch, in_features = x.shape
    n_total, d, _ = w_stack.shape
    d_out = _round_up(max(output_size, 1), LANE)

    # ---- batch tiling --------------------------------------------------
    tile_b = max(8, int(tile_b))
    tile_b = min(tile_b, _round_up(max(batch, 1), LANE))  # don't over-tile tiny batches
    b_pad = _round_up(max(batch, 1), tile_b)
    # v7x megacore: prefer >= 2 batch tiles so the "parallel" axis can shard.
    if b_pad // tile_b < 2 and tile_b > LANE:
        tile_b = max(LANE, _round_up(tile_b // 2, 8))
        b_pad = _round_up(batch, tile_b)

    # ---- VMEM budgeting / weight residency decision --------------------
    cap = _vmem_cap_bytes()
    w_itm = w_stack.dtype.itemsize

    def _vmem_est(resident_weights, tb):
        w_res = n_total * d * d * w_itm + n_total * d * 4
        w_strm = d * d * w_itm + d * 4
        wb = w_res if resident_weights else w_strm
        xb = tb * d * 2          # bf16 input tile
        ob = tb * d_out * 4      # f32 output tile
        hb = tb * d * 2          # bf16 activation scratch
        # 2x for double-buffered pipelined operands, + margin for internals.
        return 2 * (wb + xb + ob) + hb + (2 << 20)

    resident = _vmem_est(True, tile_b) <= cap
    # If even streaming does not fit, shrink the batch tile instead of
    # declaring a VMEM limit below actual usage.
    while (not resident) and _vmem_est(False, tile_b) > cap and tile_b > 8:
        tile_b = max(8, tile_b // 2)
        b_pad = _round_up(batch, tile_b)

    # ---- operands -------------------------------------------------------
    x_p = jnp.zeros((b_pad, d), jnp.bfloat16)
    x_p = x_p.at[:batch, :in_features].set(x.astype(jnp.bfloat16))

    if resident:
        # Whole weight stack resident in VMEM: constant block index -> loaded once.
        w_spec = pl.BlockSpec((n_total, d, d), lambda b, l: (0, 0, 0))
        b_spec = pl.BlockSpec((n_total, 1, d), lambda b, l: (0, 0, 0))
    else:
        # Stream one layer slab at a time, double-buffered behind the MXU.
        w_spec = pl.BlockSpec((1, d, d), lambda b, l: (l, 0, 0))
        b_spec = pl.BlockSpec((1, 1, d), lambda b, l: (l, 0, 0))

    grid = (b_pad // tile_b, n_total)

    out_padded = pl.pallas_call(
        _make_fcn_kernel(resident, d_out),
        out_shape=jax.ShapeDtypeStruct((b_pad, d_out), jnp.float32),
        grid_spec=pltpu.PrefetchScalarGridSpec(
            num_scalar_prefetch=0,
            grid=grid,
            in_specs=[
                pl.BlockSpec((tile_b, d), lambda b, l: (b, 0)),   # x batch tile
                w_spec,                                           # weights
                b_spec,                                           # biases
            ],
            out_specs=pl.BlockSpec((tile_b, d_out), lambda b, l: (b, 0)),
            scratch_shapes=[pltpu.VMEM((tile_b, d), jnp.bfloat16)],
        ),
        compiler_params=pltpu.CompilerParams(
            dimension_semantics=("parallel", "arbitrary"),
            vmem_limit_bytes=int(cap),
        ),
    )(x_p, w_stack, b_stack)

    return out_padded[:batch, :output_size]


def init_fcn_params(key, input_size, output_size, hidden_size, num_layers):
    """PyTorch nn.Linear-style init (U(-1/sqrt(fan_in), +1/sqrt(fan_in))).

    Weights stored pre-transposed to (in, out); biases as (1, out)
    (hidden layers stacked: (L, H, H) / (L, 1, H)).
    """
    keys = jax.random.split(key, 2 * (num_layers + 2))

    def linear(kw, kb, fan_in, fan_out):
        bound = 1.0 / jnp.sqrt(jnp.float32(fan_in))
        w = jax.random.uniform(kw, (fan_in, fan_out), jnp.float32, -bound, bound)
        b = jax.random.uniform(kb, (1, fan_out), jnp.float32, -bound, bound)
        return w, b

    w_in, b_in = linear(keys[0], keys[1], input_size, hidden_size)

    w_h_list, b_h_list = [], []
    for l in range(num_layers):
        w, b = linear(keys[2 + 2 * l], keys[3 + 2 * l], hidden_size, hidden_size)
        w_h_list.append(w)
        b_h_list.append(b)
    if num_layers > 0:
        w_h = jnp.stack(w_h_list)               # (L, H, H)
        b_h = jnp.stack(b_h_list)               # (L, 1, H)
    else:
        w_h = jnp.zeros((0, hidden_size, hidden_size), jnp.float32)
        b_h = jnp.zeros((0, 1, hidden_size), jnp.float32)

    w_out, b_out = linear(keys[-2], keys[-1], hidden_size, output_size)

    return {"w_in": w_in, "b_in": b_in, "w_h": w_h, "b_h": b_h,
            "w_out": w_out, "b_out": b_out}


def pack_fcn_params(params, *, input_size, output_size, hidden_size, num_layers):
    """Pad every layer to a common lane-aligned dim D and stack:
       weights -> (L+2, D, D) bf16, biases -> (L+2, 1, D) f32."""
    d = max(_round_up(input_size, LANE),
            _round_up(hidden_size, LANE),
            _round_up(output_size, LANE))
    n_total = num_layers + 2

    w_stack = jnp.zeros((n_total, d, d), jnp.float32)
    b_stack = jnp.zeros((n_total, 1, d), jnp.float32)

    w_stack = w_stack.at[0, :input_size, :hidden_size].set(params["w_in"])
    b_stack = b_stack.at[0, 0, :hidden_size].set(params["b_in"][0])
    for l in range(num_layers):
        w_stack = w_stack.at[1 + l, :hidden_size, :hidden_size].set(params["w_h"][l])
        b_stack = b_stack.at[1 + l, 0, :hidden_size].set(params["b_h"][l, 0])
    w_stack = w_stack.at[n_total - 1, :hidden_size, :output_size].set(params["w_out"])
    b_stack = b_stack.at[n_total - 1, 0, :output_size].set(params["b_out"][0])

    return w_stack.astype(jnp.bfloat16), b_stack, d


def fcn_reference(x, params, num_layers):
    """Plain-JAX f32 reference matching the PyTorch forward semantics."""
    o = x @ params["w_in"] + params["b_in"]
    o = _leaky_relu(o)
    for l in range(num_layers):
        o = o @ params["w_h"][l] + params["b_h"][l]
        o = _leaky_relu(o)
    o = o @ params["w_out"] + params["b_out"]
    return o  # output_activation = Identity


if __name__ == "__main__":
    # Small shapes consistent with the module: FCN(16, 4, 32, num_layers=2).
    batch, input_size, output_size, hidden_size, num_layers = 8, 16, 4, 32, 2

    key = jax.random.PRNGKey(0)
    k_x, k_p = jax.random.split(key)
    x = jax.random.normal(k_x, (batch, input_size), jnp.float32)
    params = init_fcn_params(k_p, input_size, output_size, hidden_size, num_layers)

    w_stack, b_stack, _ = pack_fcn_params(
        params, input_size=input_size, output_size=output_size,
        hidden_size=hidden_size, num_layers=num_layers)

    out = fcn_forward(x, w_stack, b_stack, output_size=output_size)
    out = jax.block_until_ready(out)

    ref = fcn_reference(x, params, num_layers)
    assert out.shape == (batch, output_size)
    # bf16 MXU matmuls / bf16 activations with f32 accumulation -> loose tolerance.
    assert jnp.allclose(out, ref, atol=2e-2, rtol=2e-2), "mismatch vs reference"

    print("KERNEL_OK")
</pallas_src>

<mosaic_0001>
module attributes {stable_mosaic.version = 11 : i64} {
  func.func @kernel(%arg0: i32, %arg1: i32, %arg2: memref<128x128xbf16, #tpu.memory_space<vmem>>, %arg3: memref<4x128x128xbf16, #tpu.memory_space<vmem>>, %arg4: memref<4x1x128xf32, #tpu.memory_space<vmem>>, %arg5: memref<128x128xf32, #tpu.memory_space<vmem>>, %arg6: memref<128x128xbf16, #tpu.memory_space<vmem>>) attributes {dimension_semantics = [#tpu.dimension_semantics<parallel>, #tpu.dimension_semantics<arbitrary>], iteration_bounds = array<i64: 1, 4>, scalar_prefetch = 0 : i64, scratch_operands = 1 : i64, tpu.core_type = #tpu.core_type<tc>, window_params = [{transform_indices = @transform_0, window_bounds = array<i64: 128, 128>}, {pipeline_mode = #tpu.pipeline_mode<synchronous>, transform_indices = @transform_1, window_bounds = array<i64: 4, 128, 128>}, {pipeline_mode = #tpu.pipeline_mode<synchronous>, transform_indices = @transform_2, window_bounds = array<i64: 4, 1, 128>}, {transform_indices = @transform_3, window_bounds = array<i64: 128, 128>}]} {
    %c0_i32 = arith.constant 0 : i32
    %0 = arith.cmpi eq, %arg1, %c0_i32 : i32
    %1 = arith.extui %0 : i1 to i32
    %c0_i32_0 = arith.constant 0 : i32
    %2 = arith.cmpi ne, %1, %c0_i32_0 : i32
    scf.if %2 {
      %c0_9 = arith.constant 0 : index
      %c0_10 = arith.constant 0 : index
      %19 = vector.load %arg2[%c0_9, %c0_10] : memref<128x128xbf16, #tpu.memory_space<vmem>>, vector<128x128xbf16>
      %c0_11 = arith.constant 0 : index
      %c0_12 = arith.constant 0 : index
      %20 = vector.load %arg6[%c0_11, %c0_12] : memref<128x128xbf16, #tpu.memory_space<vmem>>, vector<128x128xbf16>
      tpu.vector_store %arg6[%c0_11, %c0_12], %19 {strides = array<i32>} : memref<128x128xbf16, #tpu.memory_space<vmem>>, vector<128x128xbf16>,
    } else {
    }
    %c0 = arith.constant 0 : index
    %c0_1 = arith.constant 0 : index
    %3 = vector.load %arg6[%c0, %c0_1] : memref<128x128xbf16, #tpu.memory_space<vmem>>, vector<128x128xbf16>
    %4 = arith.index_cast %arg1 : i32 to index
    %c0_2 = arith.constant 0 : index
    %c0_3 = arith.constant 0 : index
    %5 = vector.load %arg3[%4, %c0_2, %c0_3] : memref<4x128x128xbf16, #tpu.memory_space<vmem>>, vector<1x128x128xbf16>
    %6 = vector.shape_cast %5 : vector<1x128x128xbf16> to vector<128x128xbf16>
    %cst = arith.constant dense<0.000000e+00> : vector<128x128xf32>
    %7 = tpu.matmul %3, %6, %cst {dimension_numbers = #tpu.dot_dimension_numbers<[1], [0], [0], [1], [0, 0, 1, 1], [], []>} : vector<128x128xbf16>, vector<128x128xbf16>, vector<128x128xf32> -> vector<128x128xf32>
    %8 = arith.index_cast %arg1 : i32 to index
    %c0_4 = arith.constant 0 : index
    %c0_5 = arith.constant 0 : index
    %9 = vector.load %arg4[%8, %c0_4, %c0_5] : memref<4x1x128xf32, #tpu.memory_space<vmem>>, vector<1x1x128xf32>
    %10 = vector.shape_cast %9 : vector<1x1x128xf32> to vector<1x128xf32>
    %11 = vector.broadcast %10 : vector<1x128xf32> to vector<128x128xf32>
    %12 = arith.addf %7, %11 : vector<128x128xf32>
    %c3_i32 = arith.constant 3 : i32
    %13 = arith.cmpi slt, %arg1, %c3_i32 : i32
    %14 = arith.extui %13 : i1 to i32
    %c0_i32_6 = arith.constant 0 : i32
    %15 = arith.cmpi ne, %14, %c0_i32_6 : i32
    scf.if %15 {
      %cst_9 = arith.constant 0.000000e+00 : f32
      %19 = vector.broadcast %cst_9 : f32 to vector<128x128xf32>
      %20 = arith.cmpf ogt, %12, %19 : vector<128x128xf32>
      %cst_10 = arith.constant 5.000000e-02 : f32
      %21 = vector.broadcast %cst_10 : f32 to vector<128x128xf32>
      %22 = arith.mulf %21, %12 : vector<128x128xf32>
      %23 = arith.select %20, %12, %22 : vector<128x128xi1>, vector<128x128xf32>
      %24 = arith.truncf %23 : vector<128x128xf32> to vector<128x128xbf16>
      %c0_11 = arith.constant 0 : index
      %c0_12 = arith.constant 0 : index
      %25 = vector.load %arg6[%c0_11, %c0_12] : memref<128x128xbf16, #tpu.memory_space<vmem>>, vector<128x128xbf16>
      tpu.vector_store %arg6[%c0_11, %c0_12], %24 {strides = array<i32>} : memref<128x128xbf16, #tpu.memory_space<vmem>>, vector<128x128xbf16>,
    } else {
    }
    %c3_i32_7 = arith.constant 3 : i32
    %16 = arith.cmpi eq, %arg1, %c3_i32_7 : i32
    %17 = arith.extui %16 : i1 to i32
    %c0_i32_8 = arith.constant 0 : i32
    %18 = arith.cmpi ne, %17, %c0_i32_8 : i32
    scf.if %18 {
      %c0_9 = arith.constant 0 : index
      %c0_10 = arith.constant 0 : index
      %19 = vector.load %arg5[%c0_9, %c0_10] : memref<128x128xf32, #tpu.memory_space<vmem>>, vector<128x128xf32>
      tpu.vector_store %arg5[%c0_9, %c0_10], %12 {strides = array<i32>} : memref<128x128xf32, #tpu.memory_space<vmem>>, vector<128x128xf32>,
    } else {
    }
    return
  }
  func.func @transform_0(%arg0: i32, %arg1: i32) -> (i32, i32) {
    %c0_i32 = arith.constant 0 : i32
    %c0_i32_0 = arith.constant 0 : i32
    return %arg0, %c0_i32 : i32, i32
  }
  func.func @transform_1(%arg0: i32, %arg1: i32) -> (i32, i32, i32) {
    %c0_i32 = arith.constant 0 : i32
    %c0_i32_0 = arith.constant 0 : i32
    %c0_i32_1 = arith.constant 0 : i32
    %c0_i32_2 = arith.constant 0 : i32
    return %c0_i32, %c0_i32_0, %c0_i32_1 : i32, i32, i32
  }
  func.func @transform_2(%arg0: i32, %arg1: i32) -> (i32, i32, i32) {
    %c0_i32 = arith.constant 0 : i32
    %c0_i32_0 = arith.constant 0 : i32
    %c0_i32_1 = arith.constant 0 : i32
    %c0_i32_2 = arith.constant 0 : i32
    return %c0_i32, %c0_i32_0, %c0_i32_1 : i32, i32, i32
  }
  func.func @transform_3(%arg0: i32, %arg1: i32) -> (i32, i32) {
    %c0_i32 = arith.constant 0 : i32
    %c0_i32_0 = arith.constant 0 : i32
    return %arg0, %c0_i32 : i32, i32
  }
}

</mosaic_0001>

<bundles_post_ra>
// kernel: tpu_custom_call.1
= control target key start
LH: loop header
LB: loop body
LE: loop exit
PB: predicated region body
PF: predicated region fallthrough
CT: control target
= control target key end

     0   :  { %8 = vsyncpa [#allocation4], 0  ;;  %s1182_s0 = inlined_call_operand.hbm [shape: bf16[128,128], index: 0, kind: input, shape index: {}]   ;;  %s1183_s1 = inlined_call_operand.hbm [shape: bf16[4,128,128], index: 1, kind: input, shape index: {}]   ;;  %s1184_s2 = inlined_call_operand.vmem [shape: f32[4,1,128], index: 2, kind: input, shape index: {}]   ;;  %s1185_s3 = inlined_call_operand.hbm [shape: f32[128,128], index: 3, kind: output, shape index: {}]  }
   0x1   :  { %9 = vsyncpa [#allocation7], 0 }
   0x2   :  { %10 = vsyncpa [#allocation5], 0  ;;  %s931_s12 = smov 0   ;;  %s933_s13 = smov 0  }
   0x3   :  { %s935_s14 = smov 0  }
   0x4 LB: > { %s616_s15 = sadd.s32 4294967295, %s902_s14   ;;  %s25_s16 = sadd.s32 1, %s898_s13  ;;  %s902_s14 = sphi %s935_s14, %s16_s14   ;;  %s898_s13 = sphi %s933_s13, %s1196_s13   ;;  %s894_s12 = sphi %s931_s12, %s1195_s12  }
   0x5   : > { %p26_p0 = scmp.ge.s32.totalorder %s25_s16, 4  ;;  %p617_p1 = scmp.ge.s32.totalorder %s902_s14, 1 }
   0x6   : > { %p127_p2 = scmp.lt.s32.totalorder %s902_s14, 5  ;;  %p958_p4 = scmp.eq.s32.totalorder %s616_s15, 0 }
   0x7   : > { %s1198_s16 = smov (%p26_p0, %s25_s16), 0  ;;  %s904_s19 = smov [#allocation3]  }
   0x8   : > { %p952_p3 = pnand %p617_p1, %p127_p2  ;;  %s142_s20 = sshll.u32 %s904_s19, 4  ;;  %s143_s20 = int_to_ptr.vmem [resolvable:$true] %s142_s20 }
   0x9   : > { %s1190_s18 = scalar_select %p958_p4, 1, 0 }
   0xa   : > { %s1189_s17 = scalar_select %p952_p3, 1, 0 }
   0xb   : > { %p726_p5 = pneg %p952_p3  ;;  %s905_s22 = smov [#allocation6]  }
   0xc   : > { %s155_s23 = sshll.u32 %s905_s22, 4  ;;  %s786_s26 = scalar_lea.hbm %s1182_s0, 1024  ;;  %s970_s23 = int_to_ptr.vmem [resolvable:$true] %s155_s23 }
   0xd   : > { %p966_p6 = pnand %p958_p4, %p726_p5  ;;  %p787_p7 = scmp.ne.s32.totalorder %s1182_s0, %s786_s26 }
   0xe   : > { %p793_p11 = scmp.lt.u32.totalorder %s786_s26, %s1182_s0 }
   0xf   : > { %p788_p8 = pneg %p966_p6 }
  0x11   : > { %p789_p9 = pnand %p788_p8, %p787_p7 }
  0x13   : > { %p790_p10 = pneg %p789_p9 }
  0x15   : > { %p795_p12 = pnand %p793_p11, %p790_p10 }
  0x17   : > { %798 = shalt.err (!%p795_p12)
}
  0x18   : > { %s799_s4 = scalar_lea.vmem %s143_s20, 1024  ;;  %p807_p2 = scmp.lt.s32.totalorder %s143_s20, %s143_s20 }
  0x19   : > { %p800_p13 = scmp.ne.s32.totalorder %s143_s20, %s799_s4  ;;  %p808_p5 = scmp.lt.s32.totalorder %s799_s4, %s799_s4 }
  0x1b   : > { %p802_p0 = pnand %p800_p13, %p788_p8  ;;  %p809_p4 = por %p808_p5, %p807_p2 }
  0x1d   : > { %p803_p1 = pneg %p802_p0 }
  0x1f   : > { %p810_p3 = pnand %p809_p4, %p803_p1 }
  0x21   : > { %813 = shalt.err (!%p810_p3)
}
  0x22   : > { %s906_s5 = smov 64   ;;  %s907_s6 = smov 4  }
  0x23   : > { %729 = dma.hbm_to_vmem [thread:$0]  (!%p966_p6), %s1182_s0, 1024, %s143_s20, [#allocation4], %s906_s5, %s906_s5, %s907_s6  }
  0x24   : > { %s814_s11 = scalar_lea.hbm %s1183_s1, 4096 }
  0x25   : > { %p815_p7 = scmp.ne.s32.totalorder %s1183_s1, %s814_s11  ;;  %p821_p9 = scmp.lt.u32.totalorder %s814_s11, %s1183_s1 }
  0x27   : > { %p817_p3 = pnand %p815_p7, %p788_p8 }
  0x29   : > { %p818_p4 = pneg %p817_p3 }
  0x2b   : > { %p823_p10 = pnand %p821_p9, %p818_p4 }
  0x2d   : > { %826 = shalt.err (!%p823_p10)
}
  0x2e   : > { %s827_s20 = scalar_lea.vmem %s970_s23, 4096  ;;  %p835_p0 = scmp.lt.s32.totalorder %s970_s23, %s970_s23 }
  0x2f   : > { %p828_p11 = scmp.ne.s32.totalorder %s970_s23, %s827_s20  ;;  %p836_p1 = scmp.lt.s32.totalorder %s827_s20, %s827_s20 }
  0x31   : > { %p830_p12 = pnand %p828_p11, %p788_p8  ;;  %p837_p2 = por %p836_p1, %p835_p0 }
  0x33   : > { %p831_p13 = pneg %p830_p12 }
  0x35   : > { %p838_p5 = pnand %p837_p2, %p831_p13 }
  0x37   : > { %841 = shalt.err (!%p838_p5)
}
  0x38   : > { %732 = dma.hbm_to_vmem [thread:$0]  (!%p966_p6), %s1183_s1, 4096, %s970_s23, [#allocation7], %s906_s5, %s906_s5, %s907_s6  }
  0x39   : > { %p1192_p7 = scmp.ne.s32.totalorder %s1189_s17, 0 }
  0x3a   : > { %p1193_p3 = scmp.ne.s32.totalorder (!%p1192_p7), %s1190_s18, 0 }
  0x3b   : > { %174 = sbr.rel (%p1192_p7) target bundleno = 384 (0x180), region = 32 }
  0x42   : > { %881 = dma.done.wait (%p1193_p3), [#allocation4], 1024  }
  0x43   : > { %883 = vsyncadd (%p1193_p3), [#allocation4], 4294966272 }
  0x44   : > { %885 = dma.done.wait (%p1193_p3), [#allocation7], 4096  }
  0x45   : > { %887 = vsyncadd (%p1193_p3), [#allocation7], 4294963200  ;;  %p623_p8 = scmp.ne.s32.totalorder %s894_s12, 0 }
  0x46   : > { %v770_v0 = vld [vmem:[#allocation3] sm:$0xff] (!%p623_p8)   ;;  %v771_v1 = vld [vmem:[#allocation3 + $0x8] sm:$0xff] (!%p623_p8)   ;;  %v772_v2 = vld [vmem:[#allocation3 + $0x10] sm:$0xff] (!%p623_p8)  }
  0x47   : > { %198 = sbr.rel (%p623_p8) target bundleno = 78 (0x4e), region = 44  ;;  %263 = vst [vmem:[#allocation2] sm:$0xff] (!%p623_p8), %v770_v0  ;;  %264 = vst [vmem:[#allocation2 + $0x8] sm:$0xff] (!%p623_p8), %v771_v1  ;;  %v773_v3 = vld [vmem:[#allocation3 + $0x18] sm:$0xff] (!%p623_p8)   ;;  %v774_v4 = vld [vmem:[#allocation3 + $0x20] sm:$0xff] (!%p623_p8)  }
  0x48   : > { %265 = vst [vmem:[#allocation2 + $0x10] sm:$0xff] (!%p623_p8), %v772_v2  ;;  %266 = vst [vmem:[#allocation2 + $0x18] sm:$0xff] (!%p623_p8), %v773_v3  ;;  %v775_v5 = vld [vmem:[#allocation3 + $0x28] sm:$0xff] (!%p623_p8)   ;;  %v776_v6 = vld [vmem:[#allocation3 + $0x30] sm:$0xff] (!%p623_p8)  }
  0x49   : > { %267 = vst [vmem:[#allocation2 + $0x20] sm:$0xff] (!%p623_p8), %v774_v4  ;;  %268 = vst [vmem:[#allocation2 + $0x28] sm:$0xff] (!%p623_p8), %v775_v5  ;;  %v777_v7 = vld [vmem:[#allocation3 + $0x38] sm:$0xff] (!%p623_p8)  }
  0x4a   : > { %269 = vst [vmem:[#allocation2 + $0x30] sm:$0xff] (!%p623_p8), %v776_v6  ;;  %270 = vst [vmem:[#allocation2 + $0x38] sm:$0xff] (!%p623_p8), %v777_v7 }
  0x4e PF: > { %s649_s17 = sshll.u32 %s894_s12, 6  ;;  %v271_v8 = vld [vmem:[#allocation2] sm:$0xff]  ;;  %v272_v18 = vld [vmem:[#allocation2 + $0x8] sm:$0xff]  ;;  %s298_s28 = scalar_lea.vmem %s1184_s2, %s894_s12 }
  0x4f   : > { %682 = vmatprep.mubr.bf16.mxu0 %v271_v8  ;;  %s1031_s18 = scalar_lea.vmem [#allocation6], %s649_s17  ;;  %v273_v20 = vld [vmem:[#allocation2 + $0x10] sm:$0xff]  ;;  %v274_v22 = vld [vmem:[#allocation2 + $0x18] sm:$0xff]  ;;  %v634_v24 = vld [vmem:[%s298_s28] ss:$0 sm:$0xff]  ;;  %p643_p6 = scmp.ge.s32.totalorder %s894_s12, 3 }
  0x50   : > { %v275_v9 = vld [vmem:[#allocation2 + $0x20] sm:$0xff]  ;;  %v779_v11 = vld [vmem:[%s1031_s18 + $0x8] sm:$0xff]   ;;  %v780_v12 = vld [vmem:[%s1031_s18 + $0x10] sm:$0xff]  }
  0x51   : > { %690 = vmatprep.mubr.bf16.mxu1 %v275_v9  ;;  %v778_v10 = vld [vmem:[%s1031_s18] sm:$0xff]   ;;  %v781_v13 = vld [vmem:[%s1031_s18 + $0x18] sm:$0xff]   ;;  %v783_v15 = vld [vmem:[%s1031_s18 + $0x28] sm:$0xff]  }
  0x52   : > { %666 = vmatprep.subr.bf16.mxu0 %v778_v10  ;;  %698 = vmatprep.subr.bf16.mxu1 %v778_v10  ;;  %v782_v14 = vld [vmem:[%s1031_s18 + $0x20] sm:$0xff]   ;;  %v784_v16 = vld [vmem:[%s1031_s18 + $0x30] sm:$0xff]   ;;  %v785_v17 = vld [vmem:[%s1031_s18 + $0x38] sm:$0xff]  }
  0x53   : > { %667 = vmatpush3.bf16.msra.mxu0 %v778_v10  ;;  %706 = vmatpush3.bf16.msra.mxu1 %v778_v10  ;;  %v276_v19 = vld [vmem:[#allocation2 + $0x28] sm:$0xff]  ;;  %v277_v21 = vld [vmem:[#allocation2 + $0x30] sm:$0xff]  ;;  %v278_v23 = vld [vmem:[#allocation2 + $0x38] sm:$0xff] }
  0x54   : > { %668 = vmatprep.subr.bf16.mxu0 %v779_v11  ;;  %699 = vmatprep.subr.bf16.mxu1 %v779_v11 }
  0x57   : > { %669 = vmatpush3.bf16.msra.mxu0 %v779_v11  ;;  %707 = vmatpush3.bf16.msra.mxu1 %v779_v11 }
  0x58   : > { %670 = vmatprep.subr.bf16.mxu0 %v780_v12  ;;  %700 = vmatprep.subr.bf16.mxu1 %v780_v12 }
  0x5b   : > { %671 = vmatpush3.bf16.msra.mxu0 %v780_v12  ;;  %708 = vmatpush3.bf16.msra.mxu1 %v780_v12 }
  0x5c   : > { %672 = vmatprep.subr.bf16.mxu0 %v781_v13  ;;  %701 = vmatprep.subr.bf16.mxu1 %v781_v13 }
  0x5f   : > { %673 = vmatpush3.bf16.msra.mxu0 %v781_v13  ;;  %709 = vmatpush3.bf16.msra.mxu1 %v781_v13 }
  0x60   : > { %674 = vmatprep.subr.bf16.mxu0 %v782_v14  ;;  %702 = vmatprep.subr.bf16.mxu1 %v782_v14 }
  0x63   : > { %675 = vmatpush3.bf16.msra.mxu0 %v782_v14  ;;  %710 = vmatpush3.bf16.msra.mxu1 %v782_v14 }
  0x64   : > { %676 = vmatprep.subr.bf16.mxu0 %v783_v15  ;;  %703 = vmatprep.subr.bf16.mxu1 %v783_v15 }
  0x67   : > { %677 = vmatpush3.bf16.msra.mxu0 %v783_v15  ;;  %711 = vmatpush3.bf16.msra.mxu1 %v783_v15 }
  0x68   : > { %678 = vmatprep.subr.bf16.mxu0 %v784_v16  ;;  %704 = vmatprep.subr.bf16.mxu1 %v784_v16 }
  0x6b   : > { %679 = vmatpush3.bf16.msra.mxu0 %v784_v16  ;;  %712 = vmatpush3.bf16.msra.mxu1 %v784_v16 }
  0x6c   : > { %680 = vmatprep.subr.bf16.mxu0 %v785_v17  ;;  %705 = vmatprep.subr.bf16.mxu1 %v785_v17 }
  0x6f   : > { %681 = vmatpush3.bf16.msra.mxu0 %v785_v17  ;;  %713 = vmatpush3.bf16.msra.mxu1 %v785_v17 }
  0x72   : > { %683 = vmatmul.mubr.bf16.vlgmr.msra.gmra.mrb[0].mxu0 %v272_v18  ;;  %691 = vmatmul.mubr.bf16.vlgmr.msra.gmra.mrb[0].mxu1 %v276_v19 }
  0x73   : > { %686 = vmatprep.mubr.bf16.mxu0 %v273_v20  ;;  %694 = vmatprep.mubr.bf16.mxu1 %v277_v21 }
  0x7a   : > { %687 = vmatmul.mubr.bf16.gmra.mrb[4].mxu0 %v274_v22  ;;  %695 = vmatmul.mubr.bf16.gmra.mrb[4].mxu1 %v278_v23 }
 0x145   : > { %v684_v25 = vpop.f32.mrb[0].mxu0  ;;  %v692_v26 = vpop.f32.mrb[0].mxu1 }
 0x146   : > { %v1045_v27 = vadd.f32 %v684_v25, %v634_v24  ;;  %v1047_v28 = vadd.f32 %v692_v26, %v634_v24  ;;  %v388_v29 = vpop.f32.mrb[1].mxu0  ;;  %v420_v30 = vpop.f32.mrb[1].mxu1 }
 0x147   : > { %v1049_v31 = vadd.f32 %v634_v24, %v388_v29  ;;  %v1051_v32 = vadd.f32 %v634_v24, %v420_v30  ;;  %v685_v33 = vpop.f32.mrb[2].mxu0  ;;  %v693_v34 = vpop.f32.mrb[2].mxu1 }
 0x148   : > { %v1053_v35 = vadd.f32 %v685_v33, %v634_v24  ;;  %v1055_v36 = vadd.f32 %v693_v34, %v634_v24  ;;  %v391_v37 = vpop.f32.mrb[3].mxu0  ;;  %v423_v38 = vpop.f32.mrb[3].mxu1  ;;  %vm457_vm2 = vcmp.gt.f32.partialorder (!%p643_p6), %v1045_v27, 0.0  ;;  %v473_v59 = vmul.f32 (!%p643_p6), 0.05, %v1045_v27 }
 0x149   : > { %v1057_v39 = vadd.f32 %v634_v24, %v391_v37  ;;  %v1059_v40 = vadd.f32 %v634_v24, %v423_v38  ;;  %vm455_vm0 = vcmp.gt.f32.partialorder (!%p643_p6), %v1049_v31, 0.0  ;;  %v471_v57 = vmul.f32 (!%p643_p6), 0.05, %v1049_v31 }
 0x14a   : > { %vm458_vm3 = vcmp.gt.f32.partialorder (!%p643_p6), %v1053_v35, 0.0  ;;  %v474_v60 = vmul.f32 (!%p643_p6), 0.05, %v1053_v35  ;;  %v489_v0 = vsel (!%p643_p6), %vm457_vm2, %v1045_v27, %v473_v59  ;;  %vm463_vm8 = vcmp.gt.f32.partialorder (!%p643_p6), %v1051_v32, 0.0 }
 0x14b   : > { %454 = sbr.rel (%p643_p6) target bundleno = 349 (0x15d), region = 48  ;;  %vm456_vm1 = vcmp.gt.f32.partialorder (!%p643_p6), %v1057_v39, 0.0  ;;  %v472_v58 = vmul.f32 (!%p643_p6), 0.05, %v1057_v39  ;;  %v487_v61 = vsel (!%p643_p6), %vm455_vm0, %v1049_v31, %v471_v57  ;;  %vm464_vm9 = vcmp.gt.f32.partialorder (!%p643_p6), %v1059_v40, 0.0 }
 0x14c   : > { %v490_v1 = vsel (!%p643_p6), %vm458_vm3, %v1053_v35, %v474_v60  ;;  %v479_v9 = vmul.f32 (!%p643_p6), 0.05, %v1051_v32  ;;  %v480_v10 = vmul.f32 (!%p643_p6), 0.05, %v1059_v40  ;;  %vm465_vm10 = vcmp.gt.f32.partialorder (!%p643_p6), %v1047_v28, 0.0 }
 0x14d   : > { %v688_v41 = vpop.f32.mrb[4].mxu0  ;;  %v696_v42 = vpop.f32.mrb[4].mxu1  ;;  %v488_v62 = vsel (!%p643_p6), %vm456_vm1, %v1057_v39, %v472_v58  ;;  %v504_v3 = vpack.c.bf16 (!%p643_p6), %v490_v1, %v489_v0  ;;  %vm466_vm11 = vcmp.gt.f32.partialorder (!%p643_p6), %v1055_v36, 0.0  ;;  %v481_v18 = vmul.f32 (!%p643_p6), 0.05, %v1047_v28 }
 0x14e   : > { %v1061_v43 = vadd.f32 %v688_v41, %v634_v24  ;;  %v1063_v44 = vadd.f32 %v696_v42, %v634_v24  ;;  %v404_v45 = vpop.f32.mrb[5].mxu0  ;;  %v436_v46 = vpop.f32.mrb[5].mxu1  ;;  %v503_v63 = vpack.c.bf16 (!%p643_p6), %v488_v62, %v487_v61  ;;  %v495_v15 = vsel (!%p643_p6), %vm463_vm8, %v1051_v32, %v479_v9 }
 0x14f   : > { %v1065_v47 = vadd.f32 %v634_v24, %v404_v45  ;;  %v1067_v48 = vadd.f32 %v634_v24, %v436_v46  ;;  %v689_v49 = vpop.f32.mrb[6].mxu0  ;;  %v697_v50 = vpop.f32.mrb[6].mxu1  ;;  %512 = vst [vmem:[#allocation2 + $0x8] sm:$0xff] (!%p643_p6), %v504_v3  ;;  %v496_v16 = vsel (!%p643_p6), %vm464_vm9, %v1059_v40, %v480_v10  ;;  %v482_v19 = vmul.f32 (!%p643_p6), 0.05, %v1055_v36 }
 0x150   : > { %v1069_v51 = vadd.f32 %v689_v49, %v634_v24  ;;  %v1071_v52 = vadd.f32 %v697_v50, %v634_v24  ;;  %v407_v53 = vpop.f32.mrb[7].mxu0  ;;  %v439_v54 = vpop.f32.mrb[7].mxu1  ;;  %vm461_vm6 = vcmp.gt.f32.partialorder (!%p643_p6), %v1061_v43, 0.0  ;;  %511 = vst [vmem:[#allocation2] sm:$0xff] (!%p643_p6), %v503_v63  ;;  %v477_v6 = vmul.f32 (!%p643_p6), 0.05, %v1061_v43 }
 0x151   : > { %v1073_v55 = vadd.f32 %v634_v24, %v407_v53  ;;  %v1075_v56 = vadd.f32 %v634_v24, %v439_v54  ;;  %vm459_vm4 = vcmp.gt.f32.partialorder (!%p643_p6), %v1065_v47, 0.0  ;;  %v475_v2 = vmul.f32 (!%p643_p6), 0.05, %v1065_v47 }
 0x152   : > { %vm462_vm7 = vcmp.gt.f32.partialorder %v1069_v51, 0.0  ;;  %v478_v7 = vmul.f32 0.05, %v1069_v51  ;;  %v493_v12 = vsel %vm461_vm6, %v1061_v43, %v477_v6  ;;  %v507_v17 = vpack.c.bf16 %v496_v16, %v495_v15 }
 0x153   : > { %vm460_vm5 = vcmp.gt.f32.partialorder %v1073_v55, 0.0  ;;  %v476_v4 = vmul.f32 0.05, %v1073_v55  ;;  %v491_v5 = vsel %vm459_vm4, %v1065_v47, %v475_v2  ;;  %vm467_vm12 = vcmp.gt.f32.partialorder %v1067_v48, 0.0 }
 0x154   : > { %v494_v13 = vsel %vm462_vm7, %v1069_v51, %v478_v7  ;;  %vm468_vm13 = vcmp.gt.f32.partialorder %v1075_v56, 0.0  ;;  %v483_v20 = vmul.f32 0.05, %v1067_v48  ;;  %v484_v21 = vmul.f32 0.05, %v1075_v56  ;;  %515 = vst [vmem:[#allocation2 + $0x20] sm:$0xff] %v507_v17 }
 0x155   : > { %v492_v8 = vsel %vm460_vm5, %v1073_v55, %v476_v4  ;;  %v506_v14 = vpack.c.bf16 %v494_v13, %v493_v12  ;;  %vm469_vm14 = vcmp.gt.f32.partialorder %v1063_v44, 0.0  ;;  %v497_v22 = vsel %vm465_vm10, %v1047_v28, %v481_v18 }
 0x156   : > { %v505_v11 = vpack.c.bf16 %v492_v8, %v491_v5  ;;  %v498_v23 = vsel %vm466_vm11, %v1055_v36, %v482_v19  ;;  %vm470_vm15 = vcmp.gt.f32.partialorder %v1071_v52, 0.0  ;;  %v485_v24 = vmul.f32 0.05, %v1063_v44 }
 0x157   : > { %514 = vst [vmem:[#allocation2 + $0x18] sm:$0xff] %v506_v14  ;;  %v508_v25 = vpack.c.bf16 %v498_v23, %v497_v22  ;;  %v499_v26 = vsel %vm467_vm12, %v1067_v48, %v483_v20  ;;  %v500_v29 = vsel %vm468_vm13, %v1075_v56, %v484_v21  ;;  %v486_v30 = vmul.f32 0.05, %v1071_v52 }
 0x158   : > { %513 = vst [vmem:[#allocation2 + $0x10] sm:$0xff] %v505_v11  ;;  %v509_v33 = vpack.c.bf16 %v500_v29, %v499_v26  ;;  %v501_v34 = vsel %vm469_vm14, %v1063_v44, %v485_v24 }
 0x159   : > { %516 = vst [vmem:[#allocation2 + $0x28] sm:$0xff] %v508_v25  ;;  %v502_v37 = vsel %vm470_vm15, %v1071_v52, %v486_v30 }
 0x15a   : > { %517 = vst [vmem:[#allocation2 + $0x30] sm:$0xff] %v509_v33  ;;  %v510_v38 = vpack.c.bf16 %v502_v37, %v501_v34 }
 0x15c   : > { %518 = vst [vmem:[#allocation2 + $0x38] sm:$0xff] %v510_v38 }
 0x15d PF: > { %p644_p4 = scmp.ne.s32.totalorder %s894_s12, 3 }
 0x15e   : > { %523 = vst [vmem:[#allocation8] sm:$0xff] (!%p644_p4), %v1049_v31  ;;  %524 = vst [vmem:[#allocation8 + $0x8] sm:$0xff] (!%p644_p4), %v1057_v39 }
 0x15f   : > { %522 = sbr.rel (%p644_p4) target bundleno = 358 (0x166), region = 52  ;;  %525 = vst [vmem:[#allocation8 + $0x10] sm:$0xff] (!%p644_p4), %v1045_v27  ;;  %526 = vst [vmem:[#allocation8 + $0x18] sm:$0xff] (!%p644_p4), %v1053_v35 }
 0x160   : > { %527 = vst [vmem:[#allocation8 + $0x20] sm:$0xff] (!%p644_p4), %v1065_v47  ;;  %528 = vst [vmem:[#allocation8 + $0x28] sm:$0xff] (!%p644_p4), %v1073_v55 }
 0x161   : > { %529 = vst [vmem:[#allocation8 + $0x30] sm:$0xff] (!%p644_p4), %v1061_v43  ;;  %530 = vst [vmem:[#allocation8 + $0x38] sm:$0xff] (!%p644_p4), %v1069_v51 }
 0x162   : > { %531 = vst [vmem:[#allocation8 + $0x40] sm:$0xff] (!%p644_p4), %v1051_v32  ;;  %532 = vst [vmem:[#allocation8 + $0x48] sm:$0xff] (!%p644_p4), %v1059_v40 }
 0x163   : > { %533 = vst [vmem:[#allocation8 + $0x50] sm:$0xff] (!%p644_p4), %v1047_v28  ;;  %534 = vst [vmem:[#allocation8 + $0x58] sm:$0xff] (!%p644_p4), %v1055_v36 }
 0x164   : > { %535 = vst [vmem:[#allocation8 + $0x60] sm:$0xff] (!%p644_p4), %v1067_v48  ;;  %536 = vst [vmem:[#allocation8 + $0x68] sm:$0xff] (!%p644_p4), %v1075_v56 }
 0x165   : > { %537 = vst [vmem:[#allocation8 + $0x70] sm:$0xff] (!%p644_p4), %v1063_v44  ;;  %538 = vst [vmem:[#allocation8 + $0x78] sm:$0xff] (!%p644_p4), %v1071_v52 }
 0x166 PF: > { %p1147_p9 = scmp.eq.s32.totalorder %s616_s15, 3  ;;  %s908_s29 = smov [#allocation8]  }
 0x167   : > { %s548_s30 = sshll.u32 %s908_s29, 4  ;;  %s549_s30 = int_to_ptr.vmem [resolvable:$true] %s548_s30 }
 0x168   : > { %s842_s4 = scalar_lea.vmem %s549_s30, 2048  ;;  %p849_p13 = scmp.lt.s32.totalorder %s549_s30, %s549_s30 }
 0x169   : > { %p843_p10 = scmp.ne.s32.totalorder %s549_s30, %s842_s4  ;;  %p850_p0 = scmp.lt.s32.totalorder %s842_s4, %s842_s4 }
 0x16b   : > { %p844_p11 = pnand %p843_p10, %p1147_p9  ;;  %p851_p1 = por %p850_p0, %p849_p13 }
 0x16d   : > { %p845_p12 = pneg %p844_p11 }
 0x16f   : > { %p852_p2 = pnand %p851_p1, %p845_p12 }
 0x171   : > { %855 = shalt.err (!%p852_p2)
}
 0x172   : > { %s856_s15 = scalar_lea.hbm %s1185_s3, 2048 }
 0x173   : > { %p857_p5 = scmp.ne.s32.totalorder %s1185_s3, %s856_s15  ;;  %p862_p8 = scmp.lt.u32.totalorder %s856_s15, %s1185_s3 }
 0x175   : > { %p858_p7 = pnand %p857_p5, %p1147_p9 }
 0x177   : > { %p859_p3 = pneg %p858_p7 }
 0x179   : > { %p864_p6 = pnand %p862_p8, %p859_p3 }
 0x17b   : > { %867 = shalt.err (!%p864_p6)
}
 0x17c   : > { %s909_s11 = smov 128   ;;  %s910_s19 = smov 8  }
 0x17d   : > { %723 = dma.vmem_to_hbm [thread:$0]  (%p1147_p9), %s549_s30, 2048, %s1185_s3, [#allocation5], %s909_s11, %s909_s11, %s910_s19  }
 0x17e   : > { %889 = dma.done.wait (%p1147_p9), [#allocation5], 2048  }
 0x17f   : > { %891 = vsyncadd (%p1147_p9), [#allocation5], 4294965248 }
 0x180 PF: > { %s16_s14 = sadd.s32 1, %s902_s14   ;;  %s1195_s12 = smov %s898_s13 }
 0x181   : > { %p13_p4 = scmp.ge.s32.totalorder %s16_s14, 6   ;;  %s1196_s13 = smov %s1198_s16 }
 0x183   :  { %15 = sbr.rel (!%p13_p4) target bundleno = 4 (0x4), region = 81 }
 0x18a   :  { %564 = vsyncpa [#allocation4], 1 }
 0x18b   :  { %566 = vsyncpa [#allocation4 + $0x1], 1 }
 0x18c   :  { %567 = vsyncpa [#allocation7], 1 }
 0x18d   :  { %568 = vsyncpa [#allocation5], 1 }
 0x18e   :  { %570 = vsyncpa [#allocation5 + $0x1], 1 }

</bundles_post_ra>
